<compile_context>
chip_gen: v7x
topology: tpu7x:2x2x1
jax: 0.10.0
libtpu: 0.0.40
codegen_flags: <defaults>
</compile_context>

<pallas_src>
import functools

import numpy as np
import jax
import jax.numpy as jnp
from jax import lax
from jax.experimental import pallas as pl
from jax.experimental.pallas import tpu as pltpu

IN_FEATURES = 4 * 31 * 31            # 3844
DEFAULT_TM = 1024                    # batch rows of x per grid step (sweepable)
MIN_GRID_STEPS = 4                   # keep >= 2 steps per TensorCore on v7x megacore
PACK_ROWS = 24                       # packed small-parameter slab: (24, 4) f32
VMEM_LIMIT_BYTES = 48 * 1024 * 1024  # 2 x ~15 MiB f32 x bufs + W1t + out + slack (< 64 MiB/TC)


def _round_up(n, m):
    return ((n + m - 1) // m) * m


# Packed-slab row layout (lane width 4):
#   rows  0:3   W2 (4,4)
#   rows  4:7   W3 (4,4)
#   row     8   W4^T (W4 is (4,1))
#   rows  9:11  b1, alpha1, beta1
#   rows 12:14  b2, alpha2, beta2
#   rows 15:17  b3, alpha3, beta3
#   row    18   [b4,     0, 0, 0]
#   row    19   [alpha4, 0, 0, 0]
#   row    20   [beta4,  0, 0, 0]
#   rows 21:23  zero padding (sublane count multiple of 8)


def nano_kernel(x_ref, w1t_ref, p_ref, o_ref, *, compute_dtype):
    # TODO(synk): nn.Dropout is identity in eval mode; train-mode random masking
    # is not reproduced here (eval-only kernel).
    cdt = compute_dtype
    x = x_ref[...].astype(cdt)                                  # (TM, 3844)
    w1t = w1t_ref[...].astype(cdt)                              # (4, 3844)

    # --- layer 1: the only big matmul.  x @ W1 == A·Bᵀ contraction on the
    # last dims of both operands (MXU-native, same pattern as QKᵀ). ---
    h = lax.dot_general(x, w1t, (((1,), (1,)), ((), ())),
                        preferred_element_type=jnp.float32)     # (TM, 4) f32
    h = h + p_ref[9:10, :]                                      # b1 (1,4)
    h = jnp.where(h < 0.0, h * p_ref[10:11, :], h * p_ref[11:12, :])

    # --- layer 2 ---
    h = jnp.dot(h.astype(cdt), p_ref[0:4, :].astype(cdt),
                preferred_element_type=jnp.float32)
    h = h + p_ref[12:13, :]
    h = jnp.where(h < 0.0, h * p_ref[13:14, :], h * p_ref[14:15, :])

    # --- layer 3 ---
    h = jnp.dot(h.astype(cdt), p_ref[4:8, :].astype(cdt),
                preferred_element_type=jnp.float32)
    h = h + p_ref[15:16, :]
    h = jnp.where(h < 0.0, h * p_ref[16:17, :], h * p_ref[17:18, :])

    # --- layer 4 (out_features == 1): f32 VPU multiply + 4-lane reduction ---
    h = jnp.sum(h * p_ref[8:9, :], axis=1, keepdims=True) + p_ref[18:19, 0:1]
    h = jnp.where(h < 0.0, h * p_ref[19:20, 0:1], h * p_ref[20:21, 0:1])

    o_ref[...] = h.astype(o_ref.dtype)


def make_params():
    """Deterministic parameter init mirroring NANO.__init__ (rng seed 123)."""
    rng = np.random.RandomState(123)

    def linear(in_f, out_f):
        w_bound = np.sqrt(6.0 / (in_f * out_f))
        w = np.asarray(
            rng.uniform(low=-w_bound, high=w_bound, size=(in_f, out_f)),
            dtype=np.float32)
        b = np.zeros((1, out_f), dtype=np.float32)
        return jnp.asarray(w), jnp.asarray(b)

    def prelu(n, init_alpha=0.25, init_beta=1.0):
        a = np.full((1, n), init_alpha, dtype=np.float32)
        b = np.full((1, n), init_beta, dtype=np.float32)
        return jnp.asarray(a), jnp.asarray(b)

    w1, b1 = linear(IN_FEATURES, 4)
    a1, be1 = prelu(4)
    w2, b2 = linear(4, 4)
    a2, be2 = prelu(4)
    w3, b3 = linear(4, 4)
    a3, be3 = prelu(4)
    w4, b4 = linear(4, 1)
    a4, be4 = prelu(1)
    return (w1, b1, a1, be1,
            w2, b2, a2, be2,
            w3, b3, a3, be3,
            w4, b4, a4, be4)


def pack_params(params, w1_dtype):
    """Transpose W1 to (4, F) (optionally bf16) and pack small params into one (24, 4) slab."""
    (w1, b1, a1, be1,
     w2, b2, a2, be2,
     w3, b3, a3, be3,
     w4, b4, a4, be4) = params
    p = jnp.zeros((PACK_ROWS, 4), dtype=jnp.float32)
    p = p.at[0:4, :].set(w2)
    p = p.at[4:8, :].set(w3)
    p = p.at[8, :].set(w4[:, 0])
    p = p.at[9, :].set(b1.reshape(-1))
    p = p.at[10, :].set(a1.reshape(-1))
    p = p.at[11, :].set(be1.reshape(-1))
    p = p.at[12, :].set(b2.reshape(-1))
    p = p.at[13, :].set(a2.reshape(-1))
    p = p.at[14, :].set(be2.reshape(-1))
    p = p.at[15, :].set(b3.reshape(-1))
    p = p.at[16, :].set(a3.reshape(-1))
    p = p.at[17, :].set(be3.reshape(-1))
    p = p.at[18, 0].set(b4.reshape(-1)[0])
    p = p.at[19, 0].set(a4.reshape(-1)[0])
    p = p.at[20, 0].set(be4.reshape(-1)[0])
    w1t = jnp.transpose(w1).astype(w1_dtype)     # (4, F), tiny one-time host/XLA transpose
    return w1t, p


def _choose_tm(n, tm_req):
    """Batch tile: as large as useful, but keep >= MIN_GRID_STEPS steps for big batches."""
    tm = min(int(tm_req), _round_up(max(n, 1), 8))
    if n >= MIN_GRID_STEPS * 64:
        tm = min(tm, _round_up(pl.cdiv(n, MIN_GRID_STEPS), 8))
    return max(8, _round_up(tm, 8))


def nano_forward(x, params, tm=DEFAULT_TM, use_bf16=True):
    """Fused NANO forward.  x: (N, 3844) f32 or bf16.  Returns (N, 1) f32.

    use_bf16=True (default, perf path): matmul operands cast to bf16 with f32
    accumulation — explicit numerics change vs the f32 PyTorch reference
    (~1e-2 absolute).  use_bf16=False keeps full f32 compute for verification.
    """
    N, F = x.shape
    assert F == IN_FEATURES
    cdt = jnp.bfloat16 if use_bf16 else jnp.float32
    w1t, packed = pack_params(params, cdt)

    tm_eff = _choose_tm(N, tm)
    num_steps = pl.cdiv(N, tm_eff)          # ragged last block handled by Pallas; no host pad

    flops = int(2 * N * (F * 4 + 4 * 4 + 4 * 4 + 4 * 1))
    bytes_accessed = int(N * F * x.dtype.itemsize + N * 4
                         + w1t.size * w1t.dtype.itemsize + packed.size * 4)

    kernel = functools.partial(nano_kernel, compute_dtype=cdt)

    out = pl.pallas_call(
        kernel,
        out_shape=jax.ShapeDtypeStruct((N, 1), jnp.float32),
        grid_spec=pltpu.PrefetchScalarGridSpec(
            num_scalar_prefetch=0,
            grid=(num_steps,),
            in_specs=[
                pl.BlockSpec((tm_eff, F), lambda i: (i, 0)),        # x: tiled over batch
                pl.BlockSpec((4, F), lambda i: (0, 0)),             # W1ᵀ: resident (fetched once)
                pl.BlockSpec((PACK_ROWS, 4), lambda i: (0, 0)),     # packed small params: resident
            ],
            out_specs=pl.BlockSpec((tm_eff, 1), lambda i: (i, 0)),
        ),
        compiler_params=pltpu.CompilerParams(
            dimension_semantics=("parallel",),
            vmem_limit_bytes=VMEM_LIMIT_BYTES,
        ),
        cost_estimate=pl.CostEstimate(
            flops=flops, transcendentals=0, bytes_accessed=bytes_accessed),
    )(x, w1t, packed)
    return out


def _prelu_ref(h, alpha, beta):
    # Exact MyPrelu semantics: x*(x<0)*alpha + x*(x>0)*beta.
    neg = (h < 0).astype(jnp.float32)
    pos = (h > 0).astype(jnp.float32)
    return h * neg * alpha + h * pos * beta


def nano_forward_ref(x, params):
    (w1, b1, a1, be1,
     w2, b2, a2, be2,
     w3, b3, a3, be3,
     w4, b4, a4, be4) = params
    h = x @ w1 + b1
    h = _prelu_ref(h, a1, be1)
    h = h @ w2 + b2
    h = _prelu_ref(h, a2, be2)
    h = h @ w3 + b3
    h = _prelu_ref(h, a3, be3)
    h = h @ w4 + b4
    h = _prelu_ref(h, a4, be4)
    return h


if __name__ == "__main__":
    key = jax.random.PRNGKey(0)
    k1, k2, k3 = jax.random.split(key, 3)
    params = make_params()

    # 1) f32 compute path: tight structural check against the pure-JAX reference.
    x = jax.random.normal(k1, (16, IN_FEATURES), dtype=jnp.float32)
    out_f32 = jax.block_until_ready(nano_forward(x, params, use_bf16=False))
    ref = nano_forward_ref(x, params)
    np.testing.assert_allclose(np.asarray(out_f32), np.asarray(ref), rtol=1e-5, atol=1e-5)

    # 2) default perf path (bf16 matmul operands, f32 accumulation): sign-off tolerance.
    out_bf16 = jax.block_until_ready(nano_forward(x, params))
    np.testing.assert_allclose(np.asarray(out_bf16), np.asarray(ref), rtol=5e-2, atol=5e-2)

    # 3) ragged multi-step grid, no host-side pad (batch 13, tm=8 -> grid 2, partial edge block).
    x2 = jax.random.normal(k2, (13, IN_FEATURES), dtype=jnp.float32)
    out2 = jax.block_until_ready(nano_forward(x2, params, tm=8, use_bf16=False))
    ref2 = nano_forward_ref(x2, params)
    np.testing.assert_allclose(np.asarray(out2), np.asarray(ref2), rtol=1e-5, atol=1e-5)

    # 4) x ingested as bf16 from HBM (halves the dominant x read traffic).
    x3 = jax.random.normal(k3, (24, IN_FEATURES), dtype=jnp.float32).astype(jnp.bfloat16)
    out3 = jax.block_until_ready(nano_forward(x3, params))
    ref3 = nano_forward_ref(x3.astype(jnp.float32), params)
    np.testing.assert_allclose(np.asarray(out3), np.asarray(ref3), rtol=5e-2, atol=5e-2)

    print("KERNEL_OK")
</pallas_src>

<mosaic_0001>
module attributes {stable_mosaic.version = 11 : i64} {
  func.func @nano_kernel(%arg0: i32, %arg1: memref<16x3844xf32, #tpu.memory_space<vmem>>, %arg2: memref<4x3844xf32, #tpu.memory_space<vmem>>, %arg3: memref<24x4xf32, #tpu.memory_space<vmem>>, %arg4: memref<16x1xf32, #tpu.memory_space<vmem>>) attributes {dimension_semantics = [#tpu.dimension_semantics<parallel>], iteration_bounds = array<i64: 1>, scalar_prefetch = 0 : i64, scratch_operands = 0 : i64, tpu.core_type = #tpu.core_type<tc>, window_params = [{transform_indices = @transform_0, window_bounds = array<i64: 16, 3844>}, {pipeline_mode = #tpu.pipeline_mode<synchronous>, transform_indices = @transform_1, window_bounds = array<i64: 4, 3844>}, {pipeline_mode = #tpu.pipeline_mode<synchronous>, transform_indices = @transform_2, window_bounds = array<i64: 24, 4>}, {transform_indices = @transform_3, window_bounds = array<i64: 16, 1>}]} {
    %c0 = arith.constant 0 : index
    %c0_0 = arith.constant 0 : index
    %0 = vector.load %arg1[%c0, %c0_0] : memref<16x3844xf32, #tpu.memory_space<vmem>>, vector<16x3844xf32>
    %c0_1 = arith.constant 0 : index
    %c0_2 = arith.constant 0 : index
    %1 = vector.load %arg2[%c0_1, %c0_2] : memref<4x3844xf32, #tpu.memory_space<vmem>>, vector<4x3844xf32>
    %cst = arith.constant dense<0.000000e+00> : vector<16x4xf32>
    %2 = tpu.matmul %0, %1, %cst {dimension_numbers = #tpu.dot_dimension_numbers<[1], [1], [0], [0], [0, 0, 1, 0], [], []>} : vector<16x3844xf32>, vector<4x3844xf32>, vector<16x4xf32> -> vector<16x4xf32>
    %c9 = arith.constant 9 : index
    %c0_3 = arith.constant 0 : index
    %3 = vector.load %arg3[%c9, %c0_3] : memref<24x4xf32, #tpu.memory_space<vmem>>, vector<1x4xf32>
    %4 = vector.broadcast %3 : vector<1x4xf32> to vector<16x4xf32>
    %5 = arith.addf %2, %4 : vector<16x4xf32>
    %cst_4 = arith.constant 0.000000e+00 : f32
    %6 = vector.broadcast %cst_4 : f32 to vector<16x4xf32>
    %7 = arith.cmpf olt, %5, %6 : vector<16x4xf32>
    %c10 = arith.constant 10 : index
    %c0_5 = arith.constant 0 : index
    %8 = vector.load %arg3[%c10, %c0_5] : memref<24x4xf32, #tpu.memory_space<vmem>>, vector<1x4xf32>
    %9 = vector.broadcast %8 : vector<1x4xf32> to vector<16x4xf32>
    %10 = arith.mulf %5, %9 : vector<16x4xf32>
    %c11 = arith.constant 11 : index
    %c0_6 = arith.constant 0 : index
    %11 = vector.load %arg3[%c11, %c0_6] : memref<24x4xf32, #tpu.memory_space<vmem>>, vector<1x4xf32>
    %12 = vector.broadcast %11 : vector<1x4xf32> to vector<16x4xf32>
    %13 = arith.mulf %5, %12 : vector<16x4xf32>
    %14 = arith.select %7, %10, %13 : vector<16x4xi1>, vector<16x4xf32>
    %c0_7 = arith.constant 0 : index
    %c0_8 = arith.constant 0 : index
    %15 = vector.load %arg3[%c0_7, %c0_8] : memref<24x4xf32, #tpu.memory_space<vmem>>, vector<4x4xf32>
    %cst_9 = arith.constant dense<0.000000e+00> : vector<16x4xf32>
    %16 = tpu.matmul %14, %15, %cst_9 {dimension_numbers = #tpu.dot_dimension_numbers<[1], [0], [0], [1], [0, 0, 1, 1], [], []>} : vector<16x4xf32>, vector<4x4xf32>, vector<16x4xf32> -> vector<16x4xf32>
    %c12 = arith.constant 12 : index
    %c0_10 = arith.constant 0 : index
    %17 = vector.load %arg3[%c12, %c0_10] : memref<24x4xf32, #tpu.memory_space<vmem>>, vector<1x4xf32>
    %18 = vector.broadcast %17 : vector<1x4xf32> to vector<16x4xf32>
    %19 = arith.addf %16, %18 : vector<16x4xf32>
    %cst_11 = arith.constant 0.000000e+00 : f32
    %20 = vector.broadcast %cst_11 : f32 to vector<16x4xf32>
    %21 = arith.cmpf olt, %19, %20 : vector<16x4xf32>
    %c13 = arith.constant 13 : index
    %c0_12 = arith.constant 0 : index
    %22 = vector.load %arg3[%c13, %c0_12] : memref<24x4xf32, #tpu.memory_space<vmem>>, vector<1x4xf32>
    %23 = vector.broadcast %22 : vector<1x4xf32> to vector<16x4xf32>
    %24 = arith.mulf %19, %23 : vector<16x4xf32>
    %c14 = arith.constant 14 : index
    %c0_13 = arith.constant 0 : index
    %25 = vector.load %arg3[%c14, %c0_13] : memref<24x4xf32, #tpu.memory_space<vmem>>, vector<1x4xf32>
    %26 = vector.broadcast %25 : vector<1x4xf32> to vector<16x4xf32>
    %27 = arith.mulf %19, %26 : vector<16x4xf32>
    %28 = arith.select %21, %24, %27 : vector<16x4xi1>, vector<16x4xf32>
    %c4 = arith.constant 4 : index
    %c0_14 = arith.constant 0 : index
    %29 = vector.load %arg3[%c4, %c0_14] : memref<24x4xf32, #tpu.memory_space<vmem>>, vector<4x4xf32>
    %cst_15 = arith.constant dense<0.000000e+00> : vector<16x4xf32>
    %30 = tpu.matmul %28, %29, %cst_15 {dimension_numbers = #tpu.dot_dimension_numbers<[1], [0], [0], [1], [0, 0, 1, 1], [], []>} : vector<16x4xf32>, vector<4x4xf32>, vector<16x4xf32> -> vector<16x4xf32>
    %c15 = arith.constant 15 : index
    %c0_16 = arith.constant 0 : index
    %31 = vector.load %arg3[%c15, %c0_16] : memref<24x4xf32, #tpu.memory_space<vmem>>, vector<1x4xf32>
    %32 = vector.broadcast %31 : vector<1x4xf32> to vector<16x4xf32>
    %33 = arith.addf %30, %32 : vector<16x4xf32>
    %cst_17 = arith.constant 0.000000e+00 : f32
    %34 = vector.broadcast %cst_17 : f32 to vector<16x4xf32>
    %35 = arith.cmpf olt, %33, %34 : vector<16x4xf32>
    %c16 = arith.constant 16 : index
    %c0_18 = arith.constant 0 : index
    %36 = vector.load %arg3[%c16, %c0_18] : memref<24x4xf32, #tpu.memory_space<vmem>>, vector<1x4xf32>
    %37 = vector.broadcast %36 : vector<1x4xf32> to vector<16x4xf32>
    %38 = arith.mulf %33, %37 : vector<16x4xf32>
    %c17 = arith.constant 17 : index
    %c0_19 = arith.constant 0 : index
    %39 = vector.load %arg3[%c17, %c0_19] : memref<24x4xf32, #tpu.memory_space<vmem>>, vector<1x4xf32>
    %40 = vector.broadcast %39 : vector<1x4xf32> to vector<16x4xf32>
    %41 = arith.mulf %33, %40 : vector<16x4xf32>
    %42 = arith.select %35, %38, %41 : vector<16x4xi1>, vector<16x4xf32>
    %c8 = arith.constant 8 : index
    %c0_20 = arith.constant 0 : index
    %43 = vector.load %arg3[%c8, %c0_20] : memref<24x4xf32, #tpu.memory_space<vmem>>, vector<1x4xf32>
    %44 = vector.broadcast %43 : vector<1x4xf32> to vector<16x4xf32>
    %45 = arith.mulf %42, %44 : vector<16x4xf32>
    %cst_21 = arith.constant dense<0.000000e+00> : vector<16xf32>
    %46 = vector.multi_reduction <add>, %45, %cst_21 [1] : vector<16x4xf32> to vector<16xf32>
    %47 = vector.shape_cast %46 : vector<16xf32> to vector<16x1xf32>
    %c18 = arith.constant 18 : index
    %c0_22 = arith.constant 0 : index
    %48 = vector.load %arg3[%c18, %c0_22] : memref<24x4xf32, #tpu.memory_space<vmem>>, vector<1x1xf32>
    %49 = vector.broadcast %48 : vector<1x1xf32> to vector<16x1xf32>
    %50 = arith.addf %47, %49 : vector<16x1xf32>
    %cst_23 = arith.constant 0.000000e+00 : f32
    %51 = vector.broadcast %cst_23 : f32 to vector<16x1xf32>
    %52 = arith.cmpf olt, %50, %51 : vector<16x1xf32>
    %c19 = arith.constant 19 : index
    %c0_24 = arith.constant 0 : index
    %53 = vector.load %arg3[%c19, %c0_24] : memref<24x4xf32, #tpu.memory_space<vmem>>, vector<1x1xf32>
    %54 = vector.broadcast %53 : vector<1x1xf32> to vector<16x1xf32>
    %55 = arith.mulf %50, %54 : vector<16x1xf32>
    %c20 = arith.constant 20 : index
    %c0_25 = arith.constant 0 : index
    %56 = vector.load %arg3[%c20, %c0_25] : memref<24x4xf32, #tpu.memory_space<vmem>>, vector<1x1xf32>
    %57 = vector.broadcast %56 : vector<1x1xf32> to vector<16x1xf32>
    %58 = arith.mulf %50, %57 : vector<16x1xf32>
    %59 = arith.select %52, %55, %58 : vector<16x1xi1>, vector<16x1xf32>
    %c0_26 = arith.constant 0 : index
    %c0_27 = arith.constant 0 : index
    %60 = vector.load %arg4[%c0_26, %c0_27] : memref<16x1xf32, #tpu.memory_space<vmem>>, vector<16x1xf32>
    tpu.vector_store %arg4[%c0_26, %c0_27], %59 {strides = array<i32>} : memref<16x1xf32, #tpu.memory_space<vmem>>, vector<16x1xf32>,
    return
  }
  func.func @transform_0(%arg0: i32) -> (i32, i32) {
    %c0_i32 = arith.constant 0 : i32
    %c0_i32_0 = arith.constant 0 : i32
    return %arg0, %c0_i32 : i32, i32
  }
  func.func @transform_1(%arg0: i32) -> (i32, i32) {
    %c0_i32 = arith.constant 0 : i32
    %c0_i32_0 = arith.constant 0 : i32
    %c0_i32_1 = arith.constant 0 : i32
    return %c0_i32, %c0_i32_0 : i32, i32
  }
  func.func @transform_2(%arg0: i32) -> (i32, i32) {
    %c0_i32 = arith.constant 0 : i32
    %c0_i32_0 = arith.constant 0 : i32
    %c0_i32_1 = arith.constant 0 : i32
    return %c0_i32, %c0_i32_0 : i32, i32
  }
  func.func @transform_3(%arg0: i32) -> (i32, i32) {
    %c0_i32 = arith.constant 0 : i32
    %c0_i32_0 = arith.constant 0 : i32
    return %arg0, %c0_i32 : i32, i32
  }
}

</mosaic_0001>

<bundles_post_ra>
// kernel: tpu_custom_call.1
= control target key start
LH: loop header
LB: loop body
LE: loop exit
PB: predicated region body
PF: predicated region fallthrough
CT: control target
= control target key end

     0   :  { %8 = vsyncpa [#allocation3], 0  ;;  %s1942_s0 = inlined_call_operand.hbm [shape: f32[16,3844], index: 0, kind: input, shape index: {}]   ;;  %s1943_s1 = inlined_call_operand.hbm [shape: f32[4,3844], index: 1, kind: input, shape index: {}]   ;;  %s1944_s2 = inlined_call_operand.vmem [shape: f32[24,4], index: 2, kind: input, shape index: {}]   ;;  %s1945_s3 = inlined_call_operand.vmem [shape: f32[16,1], index: 3, kind: output, shape index: {}]  }
   0x1   :  { %9 = vsyncpa [#allocation5], 0  ;;  %s1829_s12 = smov [#allocation2]   ;;  %s1781_s16 = scalar_lea.hbm %s1942_s0, 7936 }
   0x2   :  { %s15_s13 = sshll.u32 %s1829_s12, 4  ;;  %p1782_p0 = scmp.ne.s32.totalorder %s1942_s0, %s1781_s16  ;;  %s16_s13 = int_to_ptr.vmem [resolvable:$true] %s15_s13 }
   0x3   :  { %p1785_p1 = scmp.lt.u32.totalorder %s1781_s16, %s1942_s0 }
   0x5   :  { %p1787_p2 = pnand %p1785_p1, %p1782_p0 }
   0x7   :  { %1790 = shalt.err (!%p1787_p2)
}
   0x8   :  { %s1791_s21 = scalar_lea.vmem %s16_s13, 7936  ;;  %p1796_p4 = scmp.lt.s32.totalorder %s16_s13, %s16_s13 }
   0x9   :  { %p1792_p3 = scmp.ne.s32.totalorder %s16_s13, %s1791_s21  ;;  %p1797_p5 = scmp.lt.s32.totalorder %s1791_s21, %s1791_s21 }
   0xb   :  { %p1798_p6 = por %p1797_p5, %p1796_p4 }
   0xd   :  { %p1799_p7 = pnand %p1798_p6, %p1792_p3 }
   0xf   :  { %1802 = shalt.err (!%p1799_p7)
}
  0x10   :  { %s1830_s22 = smov 3968   ;;  %s1831_s23 = smov 248  }
  0x11   :  { %21 = dma.hbm_to_vmem [thread:$0]  %s1942_s0, 7936, %s16_s13, [#allocation3], %s1830_s22, %s1830_s22, %s1831_s23  }
  0x12   :  { %s1832_s26 = smov [#allocation4]   ;;  %s1803_s30 = scalar_lea.hbm %s1943_s1, 1984 }
  0x13   :  { %s28_s27 = sshll.u32 %s1832_s26, 4  ;;  %p1804_p8 = scmp.ne.s32.totalorder %s1943_s1, %s1803_s30  ;;  %s29_s27 = int_to_ptr.vmem [resolvable:$true] %s28_s27 }
  0x14   :  { %p1807_p9 = scmp.lt.u32.totalorder %s1803_s30, %s1943_s1 }
  0x16   :  { %p1809_p10 = pnand %p1807_p9, %p1804_p8 }
  0x18   :  { %1812 = shalt.err (!%p1809_p10)
}
  0x19   :  { %s1813_s8 = scalar_lea.vmem %s29_s27, 1984  ;;  %p1818_p12 = scmp.lt.s32.totalorder %s29_s27, %s29_s27 }
  0x1a   :  { %p1814_p11 = scmp.ne.s32.totalorder %s29_s27, %s1813_s8  ;;  %p1819_p13 = scmp.lt.s32.totalorder %s1813_s8, %s1813_s8 }
  0x1c   :  { %p1820_p0 = por %p1819_p13, %p1818_p12 }
  0x1e   :  { %p1821_p1 = pnand %p1820_p0, %p1814_p11 }
  0x20   :  { %1824 = shalt.err (!%p1821_p1)
}
  0x21   :  { %31 = dma.hbm_to_vmem [thread:$0]  %s1943_s1, 1984, %s29_s27, [#allocation5]  }
  0x22   :  { %1825 = dma.done.wait [#allocation3], 7936  }
  0x23   :  { %1826 = vsyncadd [#allocation3], 4294959360 }
  0x24   :  { %1827 = dma.done.wait [#allocation5], 1984  }
  0x25   :  { %1828 = vsyncadd [#allocation5], 4294965312  ;;  %v102_v0 = vld [vmem:[#allocation4] sm:$0xff]  ;;  %v109_v1 = vld [vmem:[#allocation4 + $0x38] sm:$0xff]  ;;  %vm169_vm0 = vcmask 31744   ;;  %vm1408_vm1 = vcmask 1043456  }
  0x26   :  { %v41_v2 = vld [vmem:[#allocation2 + $0x8] sm:$0xff]  ;;  %v139_v3 = vcombine.high %v102_v0, %v102_v0  ;;  %v146_v4 = vcombine.high %v109_v1, %v109_v1  ;;  %v55_v5 = vld [vmem:[#allocation2 + $0x78] sm:$0xff]  ;;  %v110_v6 = vld [vmem:[#allocation4 + $0x40] sm:$0xff]  ;;  %vm1651_vm8 = vcmask 7168  }
  0x27   :  { %242 = vmatprep.mubr.f32.mxu1 %v41_v2  ;;  %767 = vmatprep.mubr.f32.mxu0 %v55_v5  ;;  %v147_v7 = vcombine.high %v110_v6, %v110_v6  ;;  %v103_v8 = vld [vmem:[#allocation4 + $0x8] sm:$0xff]  ;;  %v40_v9 = vld [vmem:[#allocation2] sm:$0xff]  ;;  %v54_v10 = vld [vmem:[#allocation2 + $0x70] sm:$0xff] }
  0x28   :  { %178 = vmatprep.subr.mxu1 %v139_v3  ;;  %703 = vmatprep.subr.mxu0 %v146_v4  ;;  %v140_v11 = vcombine.high %v103_v8, %v103_v8  ;;  %v72_v12 = vld [vmem:[#allocation2 + $0x100] sm:$0xff]  ;;  %v111_v13 = vld [vmem:[#allocation4 + $0x48] sm:$0xff]  ;;  %v86_v14 = vld [vmem:[#allocation2 + $0x170] sm:$0xff] }
  0x29   :  { %179 = vmatpush1.xpose.msra.mxu1 %v102_v0  ;;  %704 = vmatpush1.xpose.msra.mxu0 %v109_v1  ;;  %v148_v15 = vcombine.high %v111_v13, %v111_v13  ;;  %v104_v16 = vld [vmem:[#allocation4 + $0x10] sm:$0xff]  ;;  %v71_v18 = vld [vmem:[#allocation2 + $0xf8] sm:$0xff]  ;;  %v85_v19 = vld [vmem:[#allocation2 + $0x168] sm:$0xff] }
  0x2a   :  { %778 = vmatprep.subr.mxu0 %v147_v7  ;;  %253 = vmatprep.subr.mxu1 %v140_v11  ;;  %v141_v17 = vcombine.high %v104_v16, %v104_v16  ;;  %v43_v20 = vld [vmem:[#allocation2 + $0x18] sm:$0xff]  ;;  %v57_v21 = vld [vmem:[#allocation2 + $0x88] sm:$0xff]  ;;  %v112_v22 = vld [vmem:[#allocation4 + $0x50] sm:$0xff] }
  0x2b   :  { %v105_v23 = vld [vmem:[#allocation4 + $0x18] sm:$0xff]  ;;  %v42_v24 = vld [vmem:[#allocation2 + $0x10] sm:$0xff]  ;;  %v56_v25 = vld [vmem:[#allocation2 + $0x80] sm:$0xff]  ;;  %v149_v28 = vcombine.high %v112_v22, %v112_v22 }
  0x2c   :  { %243 = vmatmul.mubr.f32.vlgmr.msra.gmra.mrb[0].mxu1 %v40_v9  ;;  %768 = vmatmul.mubr.f32.vlgmr.msra.gmra.mrb[0].mxu0 %v54_v10  ;;  %v74_v26 = vld [vmem:[#allocation2 + $0x110] sm:$0xff]  ;;  %v88_v27 = vld [vmem:[#allocation2 + $0x180] sm:$0xff]  ;;  %v142_v29 = vcombine.high %v105_v23, %v105_v23  ;;  %v73_v30 = vld [vmem:[#allocation2 + $0x108] sm:$0xff] }
  0x2d   :  { %779 = vmatpush1.xpose.msra.mxu0 %v110_v6  ;;  %247 = vmatprep.mubr.f32.mxu1 %v72_v12  ;;  %v87_v31 = vld [vmem:[#allocation2 + $0x178] sm:$0xff]  ;;  %v45_v32 = vld [vmem:[#allocation2 + $0x28] sm:$0xff]  ;;  %v106_v35 = vld [vmem:[#allocation4 + $0x20] sm:$0xff] }
  0x2e   :  { %772 = vmatprep.mubr.f32.mxu0 %v86_v14  ;;  %254 = vmatpush1.xpose.msra.mxu1 %v103_v8  ;;  %v59_v33 = vld [vmem:[#allocation2 + $0x98] sm:$0xff]  ;;  %v113_v34 = vld [vmem:[#allocation4 + $0x58] sm:$0xff]  ;;  %v44_v36 = vld [vmem:[#allocation2 + $0x20] sm:$0xff]  ;;  %v143_v41 = vcombine.high %v106_v35, %v106_v35 }
  0x2f   :  { %853 = vmatprep.subr.mxu0 %v148_v15  ;;  %328 = vmatprep.subr.mxu1 %v141_v17  ;;  %v58_v37 = vld [vmem:[#allocation2 + $0x90] sm:$0xff]  ;;  %v76_v38 = vld [vmem:[#allocation2 + $0x120] sm:$0xff]  ;;  %v150_v40 = vcombine.high %v113_v34, %v113_v34  ;;  %v75_v42 = vld [vmem:[#allocation2 + $0x118] sm:$0xff] }
  0x30   :  { %248 = vmatmul.mubr.f32.gmra.mrb[2].mxu1 %v71_v18  ;;  %773 = vmatmul.mubr.f32.gmra.mrb[2].mxu0 %v85_v19  ;;  %v90_v39 = vld [vmem:[#allocation2 + $0x190] sm:$0xff]  ;;  %v89_v43 = vld [vmem:[#allocation2 + $0x188] sm:$0xff]  ;;  %v47_v44 = vld [vmem:[#allocation2 + $0x38] sm:$0xff] }
  0x31   :  { %317 = vmatprep.mubr.f32.mxu1 %v43_v20  ;;  %842 = vmatprep.mubr.f32.mxu0 %v57_v21  ;;  %v61_v45 = vld [vmem:[#allocation2 + $0xa8] sm:$0xff]  ;;  %v114_v46 = vld [vmem:[#allocation4 + $0x60] sm:$0xff]  ;;  %v107_v47 = vld [vmem:[#allocation4 + $0x28] sm:$0xff] }
  0x32   :  { %v46_v48 = vld [vmem:[#allocation2 + $0x30] sm:$0xff]  ;;  %v60_v49 = vld [vmem:[#allocation2 + $0xa0] sm:$0xff]  ;;  %v151_v52 = vcombine.high %v114_v46, %v114_v46  ;;  %v144_v53 = vcombine.high %v107_v47, %v107_v47  ;;  %v77_v54 = vld [vmem:[#allocation2 + $0x128] sm:$0xff] }
  0x33   :  { %v78_v50 = vld [vmem:[#allocation2 + $0x130] sm:$0xff]  ;;  %v92_v51 = vld [vmem:[#allocation2 + $0x1a0] sm:$0xff]  ;;  %v91_v55 = vld [vmem:[#allocation2 + $0x198] sm:$0xff] }
  0x34   :  { %318 = vmatmul.mubr.f32.vlgmr.msra.gmra.mrb[0].mxu1 %v42_v24  ;;  %843 = vmatmul.mubr.f32.vlgmr.msra.gmra.mrb[0].mxu0 %v56_v25  ;;  %v49_v56 = vld [vmem:[#allocation2 + $0x48] sm:$0xff]  ;;  %v63_v57 = vld [vmem:[#allocation2 + $0xb8] sm:$0xff]  ;;  %v108_v59 = vld [vmem:[#allocation4 + $0x30] sm:$0xff] }
  0x35   :  { %854 = vmatpush1.xpose.msra.mxu0 %v111_v13  ;;  %322 = vmatprep.mubr.f32.mxu1 %v74_v26  ;;  %v115_v58 = vld [vmem:[#allocation4 + $0x68] sm:$0xff]  ;;  %v48_v60 = vld [vmem:[#allocation2 + $0x40] sm:$0xff]  ;;  %v62_v61 = vld [vmem:[#allocation2 + $0xb0] sm:$0xff]  ;;  %v145_v1 = vcombine.high %v108_v59, %v108_v59 }
  0x36   :  { %847 = vmatprep.mubr.f32.mxu0 %v88_v27  ;;  %329 = vmatpush1.xpose.msra.mxu1 %v104_v16  ;;  %v80_v62 = vld [vmem:[#allocation2 + $0x140] sm:$0xff]  ;;  %v94_v63 = vld [vmem:[#allocation2 + $0x1b0] sm:$0xff]  ;;  %v152_v0 = vcombine.high %v115_v58, %v115_v58  ;;  %v79_v2 = vld [vmem:[#allocation2 + $0x138] sm:$0xff] }
  0x37   :  { %928 = vmatprep.subr.mxu0 %v149_v28  ;;  %403 = vmatprep.subr.mxu1 %v142_v29  ;;  %v93_v3 = vld [vmem:[#allocation2 + $0x1a8] sm:$0xff]  ;;  %v51_v4 = vld [vmem:[#allocation2 + $0x58] sm:$0xff]  ;;  %v116_v6 = vld [vmem:[#allocation4 + $0x70] sm:$0xff] }
  0x38   :  { %323 = vmatmul.mubr.f32.gmra.mrb[2].mxu1 %v73_v30  ;;  %848 = vmatmul.mubr.f32.gmra.mrb[2].mxu0 %v87_v31  ;;  %v65_v5 = vld [vmem:[#allocation2 + $0xc8] sm:$0xff]  ;;  %v50_v7 = vld [vmem:[#allocation2 + $0x50] sm:$0xff]  ;;  %v64_v8 = vld [vmem:[#allocation2 + $0xc0] sm:$0xff]  ;;  %v153_v11 = vcombine.high %v116_v6, %v116_v6 }
  0x39   :  { %392 = vmatprep.mubr.f32.mxu1 %v45_v32  ;;  %917 = vmatprep.mubr.f32.mxu0 %v59_v33  ;;  %v82_v9 = vld [vmem:[#allocation2 + $0x150] sm:$0xff]  ;;  %v96_v10 = vld [vmem:[#allocation2 + $0x1c0] sm:$0xff]  ;;  %v117_v12 = vld [vmem:[#allocation4 + $0x78] sm:$0xf] }
  0x3a   :  { %v81_v13 = vld [vmem:[#allocation2 + $0x148] sm:$0xff]  ;;  %v95_v14 = vld [vmem:[#allocation2 + $0x1b8] sm:$0xff]  ;;  %v52_v17 = vld [vmem:[#allocation2 + $0x60] sm:$0xff] }
  0x3b   :  { %v53_v15 = vld [vmem:[#allocation2 + $0x68] sm:$0xff]  ;;  %v67_v16 = vld [vmem:[#allocation2 + $0xd8] sm:$0xff]  ;;  %v66_v18 = vld [vmem:[#allocation2 + $0xd0] sm:$0xff] }
  0x3c   :  { %393 = vmatmul.mubr.f32.vlgmr.msra.gmra.mrb[0].mxu1 %v44_v36  ;;  %918 = vmatmul.mubr.f32.vlgmr.msra.gmra.mrb[0].mxu0 %v58_v37  ;;  %v84_v19 = vld [vmem:[#allocation2 + $0x160] sm:$0xff]  ;;  %v98_v20 = vld [vmem:[#allocation2 + $0x1d0] sm:$0xff]  ;;  %v83_v21 = vld [vmem:[#allocation2 + $0x158] sm:$0xff] }
  0x3d   :  { %929 = vmatpush1.xpose.msra.mxu0 %v112_v22  ;;  %397 = vmatprep.mubr.f32.mxu1 %v76_v38  ;;  %v97_v22 = vld [vmem:[#allocation2 + $0x1c8] sm:$0xff]  ;;  %v70_v24 = vld [vmem:[#allocation2 + $0xf0] sm:$0xff]  ;;  %v68_v25 = vld [vmem:[#allocation2 + $0xe0] sm:$0xff] }
  0x3e   :  { %922 = vmatprep.mubr.f32.mxu0 %v90_v39  ;;  %404 = vmatpush1.xpose.msra.mxu1 %v105_v23  ;;  %v69_v23 = vld [vmem:[#allocation2 + $0xe8] sm:$0xff]  ;;  %v100_v27 = vld [vmem:[#allocation2 + $0x1e0] sm:$0xff]  ;;  %v99_v28 = vld [vmem:[#allocation2 + $0x1d8] sm:$0xff] }
  0x3f   :  { %1003 = vmatprep.subr.mxu0 %v150_v40  ;;  %478 = vmatprep.subr.mxu1 %v143_v41  ;;  %v101_v26 = vld [vmem:[#allocation2 + $0x1e8] sm:$0xff]  ;;  %v1396_v29 = vld [vmem:[%s1944_s2] sm:$0xf] }
  0x40   :  { %398 = vmatmul.mubr.f32.gmra.mrb[2].mxu1 %v75_v42  ;;  %923 = vmatmul.mubr.f32.gmra.mrb[2].mxu0 %v89_v43  ;;  %v1660_v32 = vld [vmem:[%s1944_s2 + $0x9] ss:$0 sm:$0xff]  ;;  %v1664_v41 = vld [vmem:[%s1944_s2 + $0xa] ss:$0 sm:$0xff]  ;;  %v1665_v42 = vld [vmem:[%s1944_s2 + $0xb] ss:$0 sm:$0xff] }
  0x41   :  { %467 = vmatprep.mubr.f32.mxu1 %v47_v44  ;;  %992 = vmatprep.mubr.f32.mxu0 %v61_v45 }
  0x44   :  { %468 = vmatmul.mubr.f32.vlgmr.msra.gmra.mrb[0].mxu1 %v46_v48  ;;  %993 = vmatmul.mubr.f32.vlgmr.msra.gmra.mrb[0].mxu0 %v60_v49 }
  0x45   :  { %1004 = vmatpush1.xpose.msra.mxu0 %v113_v34  ;;  %472 = vmatprep.mubr.f32.mxu1 %v78_v50 }
  0x46   :  { %997 = vmatprep.mubr.f32.mxu0 %v92_v51  ;;  %479 = vmatpush1.xpose.msra.mxu1 %v106_v35 }
  0x47   :  { %1078 = vmatprep.subr.mxu0 %v151_v52  ;;  %553 = vmatprep.subr.mxu1 %v144_v53 }
  0x48   :  { %473 = vmatmul.mubr.f32.gmra.mrb[2].mxu1 %v77_v54  ;;  %998 = vmatmul.mubr.f32.gmra.mrb[2].mxu0 %v91_v55  ;;  %v1505_v55 = vld [vmem:[%s1944_s2 + $0x4] sm:$0xf] }
  0x49   :  { %542 = vmatprep.mubr.f32.mxu1 %v49_v56  ;;  %1067 = vmatprep.mubr.f32.mxu0 %v63_v57  ;;  %v1666_v56 = vld [vmem:[%s1944_s2 + $0xc] ss:$0 sm:$0xff] }
  0x4c   :  { %543 = vmatmul.mubr.f32.vlgmr.msra.gmra.mrb[0].mxu1 %v48_v60  ;;  %1068 = vmatmul.mubr.f32.vlgmr.msra.gmra.mrb[0].mxu0 %v62_v61 }
  0x4d   :  { %1079 = vmatpush1.xpose.msra.mxu0 %v114_v46  ;;  %547 = vmatprep.mubr.f32.mxu1 %v80_v62 }
  0x4e   :  { %1072 = vmatprep.mubr.f32.mxu0 %v94_v63  ;;  %554 = vmatpush1.xpose.msra.mxu1 %v107_v47 }
  0x4f   :  { %1153 = vmatprep.subr.mxu0 %v152_v0  ;;  %628 = vmatprep.subr.mxu1 %v145_v1 }
  0x50   :  { %548 = vmatmul.mubr.f32.gmra.mrb[2].mxu1 %v79_v2  ;;  %1073 = vmatmul.mubr.f32.gmra.mrb[2].mxu0 %v93_v3 }
  0x51   :  { %617 = vmatprep.mubr.f32.mxu1 %v51_v4  ;;  %1142 = vmatprep.mubr.f32.mxu0 %v65_v5  ;;  %v1672_v5 = vld [vmem:[%s1944_s2 + $0xf] ss:$0 sm:$0xff] }
  0x54   :  { %618 = vmatmul.mubr.f32.vlgmr.msra.gmra.mrb[0].mxu1 %v50_v7  ;;  %1143 = vmatmul.mubr.f32.vlgmr.msra.gmra.mrb[0].mxu0 %v64_v8  ;;  %v1676_v7 = vld [vmem:[%s1944_s2 + $0x10] ss:$0 sm:$0xff]  ;;  %v1677_v8 = vld [vmem:[%s1944_s2 + $0x11] ss:$0 sm:$0xff] }
  0x55   :  { %1154 = vmatpush1.xpose.msra.mxu0 %v115_v58  ;;  %622 = vmatprep.mubr.f32.mxu1 %v82_v9  ;;  %v1670_v58 = vld [vmem:[%s1944_s2 + $0xd] ss:$0 sm:$0xff] }
  0x56   :  { %1147 = vmatprep.mubr.f32.mxu0 %v96_v10  ;;  %629 = vmatpush1.xpose.msra.mxu1 %v108_v59  ;;  %v1671_v59 = vld [vmem:[%s1944_s2 + $0xe] ss:$0 sm:$0xff] }
  0x57   :  { %1228 = vmatprep.subr.mxu0 %v153_v11  ;;  %1691 = vmatprep.subr.msk.mxu1 %vm169_vm0, %v117_v12 }
  0x58   :  { %623 = vmatmul.mubr.f32.gmra.mrb[2].mxu1 %v81_v13  ;;  %1148 = vmatmul.mubr.f32.gmra.mrb[2].mxu0 %v95_v14 }
  0x59   :  { %692 = vmatprep.mubr.f32.mxu1 %v53_v15  ;;  %1217 = vmatprep.mubr.f32.mxu0 %v67_v16  ;;  %v1678_v16 = vld [vmem:[%s1944_s2 + $0x8] ss:$0 sm:$0xff] }
  0x5c   :  { %693 = vmatmul.mubr.f32.vlgmr.msra.gmra.mrb[0].mxu1 %v52_v17  ;;  %1218 = vmatmul.mubr.f32.vlgmr.msra.gmra.mrb[0].mxu0 %v66_v18 }
  0x5d   :  { %1229 = vmatpush1.xpose.msra.mxu0 %v116_v6  ;;  %697 = vmatprep.mubr.f32.mxu1 %v84_v19 }
  0x5e   :  { %1222 = vmatprep.mubr.f32.mxu0 %v98_v20  ;;  %1692 = vmatpush3.xpose.msk.msra.mxu1 %vm169_vm0, %v117_v12 }
  0x5f   :  { %1696 = vmatprep.subr.msk.mxu1 %vm1408_vm1, %v1396_v29 }
  0x60   :  { %698 = vmatmul.mubr.f32.gmra.mrb[2].mxu1 %v83_v21  ;;  %1223 = vmatmul.mubr.f32.gmra.mrb[2].mxu0 %v97_v22 }
  0x61   :  { %1292 = vmatprep.mubr.f32.mxu0 %v69_v23  ;;  %1693 = vmatprep.mubr.msk.f32.mxu1 %vm169_vm0, %v70_v24  ;;  %v1679_v23 = vld [vmem:[%s1944_s2 + $0x12] ss:$0 sm:$0xff]  ;;  %v1680_v24 = vld [vmem:[%s1944_s2 + $0x13] ss:$0 sm:$0xff] }
  0x64   :  { %1293 = vmatmul.mubr.f32.vlgmr.msra.gmra.mrb[0].mxu0 %v68_v25  ;;  %1694 = vmatmul.mubr.msk.f32.vlgmr.msra.gmra.mrb[4].mxu1 %vm169_vm0, %v101_v26  ;;  %v1681_v25 = vld [vmem:[%s1944_s2 + $0x14] ss:$0 sm:$0xff] }
  0x65   :  { %1297 = vmatprep.mubr.f32.mxu0 %v100_v27  ;;  %1697 = vmatpush3.msk.msra.mxu1 %vm1408_vm1, %v1396_v29 }
  0x66   :  { %1701 = vmatprep.subr.msk.mxu1 %vm1408_vm1, %v1505_v55 }
  0x68   :  { %1298 = vmatmul.mubr.f32.gmra.mrb[2].mxu0 %v99_v28 }
 0x12f   :  { %v694_v30 = vpop.f32.mrb[0].mxu1 }
 0x130   :  { %v696_v31 = vpop.f32.mrb[1].mxu1  ;;  %v1706_v35 = vadd.f32 %v1660_v32, %v694_v30 }
 0x133   :  { %v699_v33 = vpop.f32.mrb[2].mxu1 }
 0x134   :  { %v701_v34 = vpop.f32.mrb[3].mxu1  ;;  %v1708_v43 = vadd.f32 %v1660_v32, %v699_v33 }
 0x137   :  { %v1294_v36 = vpop.f32.mrb[0].mxu0  ;;  %v1695_v37 = vpop.f32.mrb[4].mxu1 }
 0x138   :  { %v1707_v38 = vadd.f32 %v1706_v35, %v1294_v36  ;;  %v1296_v39 = vpop.f32.mrb[1].mxu0  ;;  %v1369_v40 = vpop.f32.mrb[5].mxu1 }
 0x13a   :  { %v1370_v44 = vadd.f32 %v1707_v38, %v1369_v40 }
 0x13b   :  { %v1299_v45 = vpop.f32.mrb[2].mxu0 }
 0x13c   :  { %vm1378_vm2 = vcmp.lt.f32.partialorder %v1370_v44, 0.0  ;;  %v1385_v46 = vmul.f32 %v1664_v41, %v1370_v44  ;;  %v1392_v47 = vmul.f32 %v1665_v42, %v1370_v44  ;;  %v1709_v48 = vadd.f32 %v1708_v43, %v1299_v45  ;;  %v1301_v49 = vpop.f32.mrb[3].mxu0 }
 0x13e   :  { %v1375_v50 = vadd.f32 %v1709_v48, %v1695_v37  ;;  %v1394_v51 = vsel %vm1378_vm2, %v1385_v46, %v1392_v47 }
 0x13f   :  { %1698 = vmatprep.mubr.msk.f32.mxu1 %vm169_vm0, %v1394_v51 }
 0x140   :  { %vm1379_vm3 = vcmp.lt.f32.partialorder %v1375_v50, 0.0  ;;  %v1386_v52 = vmul.f32 %v1664_v41, %v1375_v50  ;;  %v1393_v53 = vmul.f32 %v1665_v42, %v1375_v50 }
 0x142   :  { %v1395_v54 = vsel %vm1379_vm3, %v1386_v52, %v1393_v53 }
 0x143   :  { %1699 = vmatmul.mubr.msk.f32.vlgmr.msra.gmra.mrb[6].mxu1 %vm169_vm0, %v1395_v54 }
 0x144   :  { %1702 = vmatpush3.msk.msra.mxu1 %vm1408_vm1, %v1505_v55 }
 0x216   :  { %v1700_v57 = vpop.f32.mrb[6].mxu1 }
 0x217   :  { %v1484_v60 = vadd.f32 %v1700_v57, %v1666_v56  ;;  %v1478_v61 = vpop.f32.mrb[7].mxu1 }
 0x218   :  { %v1479_v62 = vadd.f32 %v1666_v56, %v1478_v61 }
 0x219   :  { %v1495_v63 = vmul.f32 %v1670_v58, %v1484_v60  ;;  %v1502_v0 = vmul.f32 %v1671_v59, %v1484_v60  ;;  %vm1488_vm4 = vcmp.lt.f32.partialorder %v1484_v60, 0.0 }
 0x21a   :  { %vm1487_vm5 = vcmp.lt.f32.partialorder %v1479_v62, 0.0  ;;  %v1494_v1 = vmul.f32 %v1670_v58, %v1479_v62  ;;  %v1501_v2 = vmul.f32 %v1671_v59, %v1479_v62 }
 0x21b   :  { %v1504_v4 = vsel %vm1488_vm4, %v1495_v63, %v1502_v0 }
 0x21c   :  { %v1503_v3 = vsel %vm1487_vm5, %v1494_v1, %v1501_v2 }
 0x21d   :  { %1703 = vmatprep.mubr.msk.f32.mxu1 %vm169_vm0, %v1503_v3 }
 0x21e   :  { %1704 = vmatmul.mubr.msk.f32.vlgmr.msra.gmra.mrb[8].mxu1 %vm169_vm0, %v1504_v4 }
 0x2f1   :  { %v1705_v6 = vpop.f32.mrb[8].mxu1 }
 0x2f2   :  { %v1592_v9 = vadd.f32 %v1705_v6, %v1672_v5  ;;  %v1586_v10 = vpop.f32.mrb[9].mxu1 }
 0x2f3   :  { %v1587_v11 = vadd.f32 %v1672_v5, %v1586_v10 }
 0x2f4   :  { %vm1596_vm6 = vcmp.lt.f32.partialorder %v1592_v9, 0.0  ;;  %v1603_v12 = vmul.f32 %v1676_v7, %v1592_v9  ;;  %v1610_v13 = vmul.f32 %v1677_v8, %v1592_v9 }
 0x2f5   :  { %v1602_v14 = vmul.f32 %v1676_v7, %v1587_v11  ;;  %v1609_v15 = vmul.f32 %v1677_v8, %v1587_v11  ;;  %vm1595_vm7 = vcmp.lt.f32.partialorder %v1587_v11, 0.0 }
 0x2f6   :  { %v1612_v18 = vsel %vm1596_vm6, %v1603_v12, %v1610_v13 }
 0x2f7   :  { %v1611_v17 = vsel %vm1595_vm7, %v1602_v14, %v1609_v15  ;;  %v1619_v21 = vmul.f32 %v1678_v16, %v1612_v18 }
 0x2f8   :  { %v1618_v19 = vmul.f32 %v1678_v16, %v1611_v17 }
 0x2f9   :  { %v1623_v22 = vsel %vm169_vm0, %v1619_v21, 0.0 }
 0x2fa   :  { %v1620_v20 = vsel %vm169_vm0, %v1618_v19, 0.0 }
 0x2fb   :  { %1621 = vadd.xlane.f32.xlu0 %v1620_v20 }
 0x2ff   :  { %1624 = vadd.xlane.f32.xlu0 %v1623_v22 }
 0x388   :  { %v1622_v26 = vpop.xlane.xlu0 %1621 }
 0x389   :  { %v1631_v27 = vadd.f32 %v1679_v23, %v1622_v26 }
 0x38b   :  { %vm1633_vm9 = vcmp.lt.f32.partialorder %v1631_v27, 0.0  ;;  %v1640_v28 = vmul.f32 %v1680_v24, %v1631_v27  ;;  %v1647_v29 = vmul.f32 %v1681_v25, %v1631_v27 }
 0x38c   :  { %v1625_v30 = vpop.xlane.xlu0 %1624 }
 0x38d   :  { %v1649_v31 = vsel %vm1633_vm9, %v1640_v28, %v1647_v29  ;;  %v1632_v32 = vadd.f32 %v1679_v23, %v1625_v30 }
 0x38e   :  { %1652 = vst.msk [vmem:[%s1945_s3] sm:$0xff] %vm1651_vm8, %v1649_v31 }
 0x38f   :  { %vm1634_vm10 = vcmp.lt.f32.partialorder %v1632_v32, 0.0  ;;  %v1641_v33 = vmul.f32 %v1680_v24, %v1632_v32  ;;  %v1648_v34 = vmul.f32 %v1681_v25, %v1632_v32 }
 0x391   :  { %v1650_v35 = vsel %vm1634_vm10, %v1641_v33, %v1648_v34 }
 0x392   :  { %1653 = vst.msk [vmem:[%s1945_s3 + $0x8] sm:$0xff] %vm1651_vm8, %v1650_v35 }
 0x393   :  { %1658 = vsyncpa [#allocation3], 1 }
 0x394   :  { %1659 = vsyncpa [#allocation5], 1 }

</bundles_post_ra>
